<compile_context>
chip_gen: v7x
topology: tpu7x:2x2x1
jax: 0.10.0
libtpu: 0.0.40
codegen_flags: <defaults>
</compile_context>

<pallas_src>
import functools
import math

import jax
import jax.numpy as jnp
from jax.experimental import pallas as pl
from jax.experimental.pallas import tpu as pltpu


# ----------------------------- small helpers ---------------------------------

def _round_up(x, m):
    return ((x + m - 1) // m) * m


def _pick_row_tile(n_rows):
    """MXU-friendly row tile; pad-to-tile handled by the caller."""
    for t in (256, 128):
        if n_rows % t == 0:
            return t
    return 256 if n_rows > 256 else _round_up(n_rows, 8)


def _pick_tile(n, target, align):
    """Largest t <= target with t % align == 0 and n % t == 0; else full n."""
    if n <= target:
        return n
    t = (target // align) * align
    while t >= align:
        if n % t == 0:
            return t
        t -= align
    return n


def _resident_spec(block_shape, index_map):
    """Constant-block-index weight spec; single-buffered when the running JAX
    supports pipeline_mode (halves resident-weight VMEM -- matters on v7x's
    64 MiB); silently falls back to the default double-buffered spec."""
    if hasattr(pl, "Buffered"):
        try:
            return pl.BlockSpec(block_shape, index_map, pipeline_mode=pl.Buffered(1))
        except TypeError:
            pass
    return pl.BlockSpec(block_shape, index_map)


def _layer_norm(v, gamma, beta, eps=1e-5):
    mu = jnp.mean(v, axis=-1, keepdims=True)
    var = jnp.mean((v - mu) ** 2, axis=-1, keepdims=True)
    return (v - mu) * jax.lax.rsqrt(var + eps) * gamma + beta


# ------------------------------ kernels ---------------------------------------

def _qkv_kernel(x_ref, w_ref, b_ref, q_ref, k_ref, v_ref, *, hdk, hdv):
    """Fused Q|K|V projection: one MXU pass over the concatenated weight."""
    x = x_ref[...].astype(jnp.bfloat16)                                  # (TM, D)
    y = jnp.dot(x, w_ref[...], preferred_element_type=jnp.float32) + b_ref[...]
    q_ref[...] = y[:, :hdk].astype(q_ref.dtype)        # already scaled by 1/sqrt(dk)
    k_ref[...] = y[:, hdk:2 * hdk].astype(k_ref.dtype)
    v_ref[...] = y[:, 2 * hdk:2 * hdk + hdv].astype(v_ref.dtype)


def _attn_kernel(q_ref, k_ref, v_ref, mask_ref, *refs,
                 n_heads, d_k, d_v, return_attn):
    """All-heads attention for one (batch, q-tile); online softmax over KV tiles."""
    if return_attn:
        ctx_ref, attn_ref, m_sc, l_sc, acc_sc = refs
    else:
        ctx_ref, m_sc, l_sc, acc_sc = refs
        attn_ref = None

    ki = pl.program_id(2)
    n_k = pl.num_programs(2)

    @pl.when(ki == 0)
    def _():
        m_sc[...] = jnp.full_like(m_sc, -jnp.inf)
        l_sc[...] = jnp.zeros_like(l_sc)
        acc_sc[...] = jnp.zeros_like(acc_sc)

    masked = mask_ref[0] != 0                 # (Tq, Tk) bool, shared across heads
    q_all = q_ref[0]                          # (Tq, H*dk) bf16, pre-scaled
    k_all = k_ref[0]                          # (Tk, H*dk) bf16
    v_all = v_ref[0]                          # (Tk, H*dv) bf16

    for h in range(n_heads):
        qh = q_all[:, h * d_k:(h + 1) * d_k]
        kh = k_all[:, h * d_k:(h + 1) * d_k]
        vh = v_all[:, h * d_v:(h + 1) * d_v]

        s = jnp.einsum('qd,kd->qk', qh, kh,
                       preferred_element_type=jnp.float32)              # (Tq, Tk)
        s = jnp.where(masked, -1e9, s)        # torch masked_fill_(-1e9) semantics

        m_prev = m_sc[:, h:h + 1]
        m_new = jnp.maximum(m_prev, jnp.max(s, axis=-1, keepdims=True))
        alpha = jnp.exp(m_prev - m_new)
        p = jnp.exp(s - m_new)
        row_sum = jnp.sum(p, axis=-1, keepdims=True)

        l_sc[:, h:h + 1] = alpha * l_sc[:, h:h + 1] + row_sum
        sl = slice(h * d_v, (h + 1) * d_v)
        acc_sc[:, sl] = alpha * acc_sc[:, sl] + jnp.dot(
            p.astype(v_all.dtype), vh, preferred_element_type=jnp.float32)
        m_sc[:, h:h + 1] = m_new

        if return_attn:
            # Wrapper guarantees a single KV tile here, so p / row_sum is the
            # final softmax. Exact divide for the user-visible tensor.
            attn_ref[0, h] = (p / row_sum).astype(attn_ref.dtype)

    @pl.when(ki == n_k - 1)
    def _():
        parts = []
        for h in range(n_heads):
            inv = pl.reciprocal(l_sc[:, h:h + 1], approx=True)           # EUP
            parts.append(acc_sc[:, h * d_v:(h + 1) * d_v] * inv)
        ctx_ref[0] = jnp.concatenate(parts, axis=-1).astype(ctx_ref.dtype)


def _proj_ffn_kernel(ctx_ref, x_ref, wo_ref, bo_ref, g1_ref, be1_ref,
                     w1_ref, b1_ref, w2_ref, b2_ref, g2_ref, be2_ref,
                     out_ref, a_sc, acc_sc):
    """Wo projection + residual + LN1, then position-wise FFN with the d_ff
    axis tiled over grid axis 1 (f32 VMEM accumulator), + residual + LN2."""
    f = pl.program_id(1)

    @pl.when(f == 0)
    def _():
        proj = jnp.dot(ctx_ref[...], wo_ref[...],
                       preferred_element_type=jnp.float32) + bo_ref[...]
        a_sc[...] = _layer_norm(proj + x_ref[...], g1_ref[...], be1_ref[...])
        acc_sc[...] = jnp.zeros_like(acc_sc)

    h1 = jnp.dot(a_sc[...].astype(jnp.bfloat16), w1_ref[...],
                 preferred_element_type=jnp.float32) + b1_ref[...]
    h1 = jnp.maximum(h1, 0.0)                                            # ReLU
    acc_sc[...] += jnp.dot(h1.astype(jnp.bfloat16), w2_ref[...],
                           preferred_element_type=jnp.float32)

    @pl.when(f == pl.num_programs(1) - 1)
    def _():
        h2 = acc_sc[...] + b2_ref[...]
        out_ref[...] = _layer_norm(h2 + a_sc[...], g2_ref[...],
                                   be2_ref[...]).astype(out_ref.dtype)


# ------------------------------ wrapper ---------------------------------------

def encoder_layer(x, attn_mask, params, *, n_heads, d_k, d_v,
                  return_attn=False, matmul_dtype=jnp.bfloat16,
                  attn_dtype=jnp.float32,
                  max_q_tile=256, max_kv_tile=512, max_ff_tile=1024):
    """EncoderLayer forward. x: (B,S,D) f32, attn_mask: (B,S,S), nonzero==masked.
    Returns (out (B,S,D) f32, attn (B,H,S,S) or None)."""
    B, S, D = x.shape
    f32 = jnp.float32
    mm = matmul_dtype
    HDk = n_heads * d_k
    HDv = n_heads * d_v
    d_ff = params["W1"].shape[1]

    BS = B * S
    TM = _pick_row_tile(BS)
    BS_pad = _round_up(BS, TM)
    n_row = BS_pad // TM

    # Sequence tiling; returning attention weights requires a single KV tile.
    Tq = _pick_tile(S, max_q_tile, 8)
    Tk = S if return_attn else _pick_tile(S, max_kv_tile, 128)
    n_q, n_k = S // Tq, S // Tk

    Tff = _pick_tile(d_ff, max_ff_tile, 128)
    n_ff = d_ff // Tff

    # ---- trace-time weight prep: fold 1/sqrt(d_k) into Wq/bq, fuse Q|K|V into
    #      one (D, 2*HDk+HDv) weight, cast MXU weights to bf16; biases / LN
    #      params stay f32 (added post-accumulation). ----
    inv_sqrt_dk = 1.0 / math.sqrt(d_k)
    w_qkv = jnp.concatenate(
        [params["Wq"] * inv_sqrt_dk, params["Wk"], params["Wv"]], axis=1).astype(mm)
    b_qkv = jnp.concatenate(
        [params["bq"] * inv_sqrt_dk, params["bk"], params["bv"]], axis=1).astype(f32)
    tot = 2 * HDk + HDv

    wo = params["Wo"].astype(mm)
    bo = params["bo"].astype(f32)
    w1 = params["W1"].astype(mm)
    b1 = params["b1"].astype(f32)
    w2 = params["W2"].astype(mm)
    b2 = params["b2"].astype(f32)
    g1 = params["ln1_g"].astype(f32)
    be1 = params["ln1_b"].astype(f32)
    g2 = params["ln2_g"].astype(f32)
    be2 = params["ln2_b"].astype(f32)

    x_flat = x.reshape(BS, D).astype(f32)
    if BS_pad != BS:
        x_flat = jnp.pad(x_flat, ((0, BS_pad - BS), (0, 0)))
    mask_i8 = (attn_mask != 0).astype(jnp.int8)

    vmem_limit = 64 * 1024 * 1024   # TODO(synk): drop to <=48 MiB on v7x (64 MiB/TC)

    rows = lambda i: (i, 0)
    const1 = lambda i: (0, 0)

    # ---------------- kernel 1: fused QKV projection over row tiles -----------
    qkv_cost = pl.CostEstimate(
        flops=2 * BS_pad * D * tot,
        transcendentals=0,
        bytes_accessed=BS_pad * D * 4 + D * tot * 2 + tot * 4 + BS_pad * tot * 2)
    q, k, v = pl.pallas_call(
        functools.partial(_qkv_kernel, hdk=HDk, hdv=HDv),
        out_shape=(jax.ShapeDtypeStruct((BS_pad, HDk), mm),
                   jax.ShapeDtypeStruct((BS_pad, HDk), mm),
                   jax.ShapeDtypeStruct((BS_pad, HDv), mm)),
        grid=(n_row,),
        in_specs=[pl.BlockSpec((TM, D), rows),
                  _resident_spec((D, tot), const1),
                  _resident_spec((1, tot), const1)],
        out_specs=(pl.BlockSpec((TM, HDk), rows),
                   pl.BlockSpec((TM, HDk), rows),
                   pl.BlockSpec((TM, HDv), rows)),
        compiler_params=pltpu.CompilerParams(
            dimension_semantics=("parallel",), vmem_limit_bytes=vmem_limit),
        cost_estimate=qkv_cost,
    )(x_flat, w_qkv, b_qkv)

    # Free reshapes only -- no head-split transposes through HBM.
    qh = q[:BS].reshape(B, S, HDk)
    kh = k[:BS].reshape(B, S, HDk)
    vh = v[:BS].reshape(B, S, HDv)

    # ---------------- kernel 2: attention core, grid=(B, q_tiles, kv_tiles) ----
    out_shapes = [jax.ShapeDtypeStruct((B, S, HDv), mm)]
    out_specs = [pl.BlockSpec((1, Tq, HDv), lambda b, qi, ki: (b, qi, 0))]
    if return_attn:
        out_shapes.append(jax.ShapeDtypeStruct((B, n_heads, S, S), attn_dtype))
        out_specs.append(
            pl.BlockSpec((1, n_heads, Tq, S), lambda b, qi, ki: (b, 0, qi, 0)))

    attn_itemsize = jnp.dtype(attn_dtype).itemsize
    attn_cost = pl.CostEstimate(
        flops=2 * B * S * S * (HDk + HDv),
        transcendentals=B * n_heads * S * S,
        bytes_accessed=(B * S * (2 * HDk + HDv) * 2 + B * S * S + B * S * HDv * 2
                        + (B * n_heads * S * S * attn_itemsize if return_attn else 0)))

    res = pl.pallas_call(
        functools.partial(_attn_kernel, n_heads=n_heads, d_k=d_k, d_v=d_v,
                          return_attn=return_attn),
        out_shape=tuple(out_shapes),
        grid=(B, n_q, n_k),
        in_specs=[pl.BlockSpec((1, Tq, HDk), lambda b, qi, ki: (b, qi, 0)),
                  pl.BlockSpec((1, Tk, HDk), lambda b, qi, ki: (b, ki, 0)),
                  pl.BlockSpec((1, Tk, HDv), lambda b, qi, ki: (b, ki, 0)),
                  pl.BlockSpec((1, Tq, Tk), lambda b, qi, ki: (b, qi, ki))],
        out_specs=tuple(out_specs),
        scratch_shapes=[pltpu.VMEM((Tq, n_heads), jnp.float32),   # running max
                        pltpu.VMEM((Tq, n_heads), jnp.float32),   # running denom
                        pltpu.VMEM((Tq, HDv), jnp.float32)],      # running ctx acc
        compiler_params=pltpu.CompilerParams(
            dimension_semantics=("parallel", "parallel", "arbitrary"),
            vmem_limit_bytes=vmem_limit),
        cost_estimate=attn_cost,
    )(qh, kh, vh, mask_i8)
    ctx = res[0]
    attn = res[1] if return_attn else None

    # ctx is already (B, S, H*dv): flattening rows is free (no HBM transpose).
    ctx2 = ctx.reshape(BS, HDv)
    if BS_pad != BS:
        ctx2 = jnp.pad(ctx2, ((0, BS_pad - BS), (0, 0)))

    # ------------- kernel 3: Wo proj + LN1 + FFN (d_ff tiled) + LN2 -------------
    ffn_cost = pl.CostEstimate(
        flops=2 * BS_pad * (HDv * D + 2 * D * d_ff),
        transcendentals=2 * BS_pad,
        bytes_accessed=(BS_pad * HDv * 2 + BS_pad * D * 4
                        + (HDv * D + 2 * D * d_ff) * 2 + BS_pad * D * 4))

    out_flat = pl.pallas_call(
        _proj_ffn_kernel,
        out_shape=jax.ShapeDtypeStruct((BS_pad, D), f32),
        grid=(n_row, n_ff),
        in_specs=[pl.BlockSpec((TM, HDv), lambda i, f: (i, 0)),
                  pl.BlockSpec((TM, D), lambda i, f: (i, 0)),
                  _resident_spec((HDv, D), lambda i, f: (0, 0)),
                  _resident_spec((1, D), lambda i, f: (0, 0)),
                  _resident_spec((1, D), lambda i, f: (0, 0)),
                  _resident_spec((1, D), lambda i, f: (0, 0)),
                  pl.BlockSpec((D, Tff), lambda i, f: (0, f)),
                  pl.BlockSpec((1, Tff), lambda i, f: (0, f)),
                  pl.BlockSpec((Tff, D), lambda i, f: (f, 0)),
                  _resident_spec((1, D), lambda i, f: (0, 0)),
                  _resident_spec((1, D), lambda i, f: (0, 0)),
                  _resident_spec((1, D), lambda i, f: (0, 0))],
        out_specs=pl.BlockSpec((TM, D), lambda i, f: (i, 0)),
        scratch_shapes=[pltpu.VMEM((TM, D), jnp.float32),   # LN1 out / LN2 residual
                        pltpu.VMEM((TM, D), jnp.float32)],  # W2 accumulator
        compiler_params=pltpu.CompilerParams(
            dimension_semantics=("parallel", "arbitrary"),
            vmem_limit_bytes=vmem_limit),
        cost_estimate=ffn_cost,
    )(ctx2, x_flat, wo, bo, g1, be1, w1, b1, w2, b2, g2, be2)

    out = out_flat[:BS].reshape(B, S, D)
    return out, attn


# --------------------------- pure-JAX reference -------------------------------

def ref_encoder_layer(x, attn_mask, p, *, n_heads, d_k, d_v):
    B, S, D = x.shape
    q = (x @ p["Wq"] + p["bq"]).reshape(B, S, n_heads, d_k).transpose(0, 2, 1, 3)
    k = (x @ p["Wk"] + p["bk"]).reshape(B, S, n_heads, d_k).transpose(0, 2, 1, 3)
    v = (x @ p["Wv"] + p["bv"]).reshape(B, S, n_heads, d_v).transpose(0, 2, 1, 3)
    scores = jnp.einsum("bhqd,bhkd->bhqk", q, k) / math.sqrt(d_k)
    scores = jnp.where(attn_mask[:, None, :, :] != 0, -1e9, scores)
    attn = jax.nn.softmax(scores, axis=-1)
    ctx = jnp.einsum("bhqk,bhkd->bhqd", attn, v).transpose(0, 2, 1, 3)
    ctx = ctx.reshape(B, S, n_heads * d_v)
    proj = ctx @ p["Wo"] + p["bo"]

    def ln(v_, g, b, eps=1e-5):
        mu = v_.mean(-1, keepdims=True)
        var = ((v_ - mu) ** 2).mean(-1, keepdims=True)
        return (v_ - mu) / jnp.sqrt(var + eps) * g + b

    a = ln(proj + x, p["ln1_g"], p["ln1_b"])
    h1 = jnp.maximum(a @ p["W1"] + p["b1"], 0.0)
    h2 = h1 @ p["W2"] + p["b2"]
    return ln(h2 + a, p["ln2_g"], p["ln2_b"]), attn


def _make_params(key, d_model, d_k, d_v, n_heads, d_ff):
    ks = jax.random.split(key, 12)

    def rnd(k_, shape, scale=0.1):
        return scale * jax.random.normal(k_, shape, jnp.float32)

    return {
        "Wq": rnd(ks[0], (d_model, n_heads * d_k)),
        "bq": rnd(ks[1], (1, n_heads * d_k)),
        "Wk": rnd(ks[2], (d_model, n_heads * d_k)),
        "bk": rnd(ks[3], (1, n_heads * d_k)),
        "Wv": rnd(ks[4], (d_model, n_heads * d_v)),
        "bv": rnd(ks[5], (1, n_heads * d_v)),
        "Wo": rnd(ks[6], (n_heads * d_v, d_model)),
        "bo": rnd(ks[7], (1, d_model)),
        "ln1_g": jnp.ones((1, d_model), jnp.float32),
        "ln1_b": jnp.zeros((1, d_model), jnp.float32),
        # Conv1d(d_model->d_ff, k=1) / Conv1d(d_ff->d_model, k=1) weights, transposed
        "W1": rnd(ks[8], (d_model, d_ff)),
        "b1": rnd(ks[9], (1, d_ff)),
        "W2": rnd(ks[10], (d_ff, d_model)),
        "b2": rnd(ks[11], (1, d_model)),
        "ln2_g": jnp.ones((1, d_model), jnp.float32),
        "ln2_b": jnp.zeros((1, d_model), jnp.float32),
    }


# --------------------------------- main ---------------------------------------

if __name__ == "__main__":
    key = jax.random.PRNGKey(0)
    k_p, k_x, k_p2, k_x2 = jax.random.split(key, 4)

    # ---- test 1: tiny shapes, attention weights requested (single KV tile) ----
    B, S = 2, 8
    d_model, d_k, d_v, n_heads, d_ff = 32, 8, 8, 4, 64
    params = _make_params(k_p, d_model, d_k, d_v, n_heads, d_ff)
    x = jax.random.normal(k_x, (B, S, d_model), jnp.float32)
    mask = jnp.zeros((B, S, S), jnp.int32).at[:, :, -2:].set(1)   # mask last 2 keys

    out, attn = encoder_layer(x, mask, params, n_heads=n_heads, d_k=d_k, d_v=d_v,
                              return_attn=True)
    jax.block_until_ready((out, attn))

    out_ref, attn_ref = ref_encoder_layer(x, mask, params,
                                          n_heads=n_heads, d_k=d_k, d_v=d_v)
    # bf16 MXU inputs + approx reciprocal -> relaxed tolerance
    assert jnp.allclose(out, out_ref, atol=5e-2, rtol=5e-2), "output mismatch (test 1)"
    assert jnp.allclose(attn, attn_ref, atol=2e-2, rtol=2e-2), "attn mismatch (test 1)"
    assert jnp.allclose(attn.sum(-1), 1.0, atol=1e-2), "attn rows not normalized"

    # ---- test 2: exercises KV-tile / q-tile / d_ff-tile paths (no attn out) ----
    B2, S2, d_ff2 = 2, 256, 256
    params2 = _make_params(k_p2, d_model, d_k, d_v, n_heads, d_ff2)
    x2 = jax.random.normal(k_x2, (B2, S2, d_model), jnp.float32)
    mask2 = jnp.zeros((B2, S2, S2), jnp.int32).at[:, :, -5:].set(1)

    out2, attn2 = encoder_layer(x2, mask2, params2, n_heads=n_heads, d_k=d_k, d_v=d_v,
                                return_attn=False,
                                max_q_tile=128, max_kv_tile=128, max_ff_tile=128)
    jax.block_until_ready(out2)
    out2_ref, _ = ref_encoder_layer(x2, mask2, params2,
                                    n_heads=n_heads, d_k=d_k, d_v=d_v)
    assert attn2 is None
    assert jnp.allclose(out2, out2_ref, atol=5e-2, rtol=5e-2), "output mismatch (test 2)"

    print("KERNEL_OK")
</pallas_src>

<mosaic_0001>
module attributes {stable_mosaic.version = 11 : i64} {
  func.func @_qkv_kernel(%arg0: i32, %arg1: memref<16x32xf32, #tpu.memory_space<vmem>>, %arg2: memref<32x96xbf16, #tpu.memory_space<vmem>>, %arg3: memref<1x96xf32, #tpu.memory_space<vmem>>, %arg4: memref<16x32xbf16, #tpu.memory_space<vmem>>, %arg5: memref<16x32xbf16, #tpu.memory_space<vmem>>, %arg6: memref<16x32xbf16, #tpu.memory_space<vmem>>) attributes {dimension_semantics = [#tpu.dimension_semantics<parallel>], iteration_bounds = array<i64: 1>, scalar_prefetch = 0 : i64, scratch_operands = 0 : i64, tpu.core_type = #tpu.core_type<tc>, window_params = [{transform_indices = @transform_0, window_bounds = array<i64: 16, 32>}, {pipeline_mode = #tpu.pipeline_mode<synchronous>, transform_indices = @transform_1, window_bounds = array<i64: 32, 96>}, {pipeline_mode = #tpu.pipeline_mode<synchronous>, transform_indices = @transform_2, window_bounds = array<i64: 1, 96>}, {transform_indices = @transform_3, window_bounds = array<i64: 16, 32>}, {transform_indices = @transform_4, window_bounds = array<i64: 16, 32>}, {transform_indices = @transform_5, window_bounds = array<i64: 16, 32>}]} {
    %c0 = arith.constant 0 : index
    %c0_0 = arith.constant 0 : index
    %0 = vector.load %arg1[%c0, %c0_0] : memref<16x32xf32, #tpu.memory_space<vmem>>, vector<16x32xf32>
    %1 = arith.truncf %0 : vector<16x32xf32> to vector<16x32xbf16>
    %c0_1 = arith.constant 0 : index
    %c0_2 = arith.constant 0 : index
    %2 = vector.load %arg2[%c0_1, %c0_2] : memref<32x96xbf16, #tpu.memory_space<vmem>>, vector<32x96xbf16>
    %cst = arith.constant dense<0.000000e+00> : vector<16x96xf32>
    %3 = tpu.matmul %1, %2, %cst {dimension_numbers = #tpu.dot_dimension_numbers<[1], [0], [0], [1], [0, 0, 1, 1], [], []>} : vector<16x32xbf16>, vector<32x96xbf16>, vector<16x96xf32> -> vector<16x96xf32>
    %c0_3 = arith.constant 0 : index
    %c0_4 = arith.constant 0 : index
    %4 = vector.load %arg3[%c0_3, %c0_4] : memref<1x96xf32, #tpu.memory_space<vmem>>, vector<1x96xf32>
    %5 = vector.broadcast %4 : vector<1x96xf32> to vector<16x96xf32>
    %6 = arith.addf %3, %5 : vector<16x96xf32>
    %7 = vector.extract_strided_slice %6 {offsets = [0, 0], sizes = [16, 32], strides = [1, 1]} : vector<16x96xf32> to vector<16x32xf32>
    %8 = arith.truncf %7 : vector<16x32xf32> to vector<16x32xbf16>
    %c0_5 = arith.constant 0 : index
    %c0_6 = arith.constant 0 : index
    %9 = vector.load %arg4[%c0_5, %c0_6] : memref<16x32xbf16, #tpu.memory_space<vmem>>, vector<16x32xbf16>
    tpu.vector_store %arg4[%c0_5, %c0_6], %8 {strides = array<i32>} : memref<16x32xbf16, #tpu.memory_space<vmem>>, vector<16x32xbf16>,
    %10 = vector.extract_strided_slice %6 {offsets = [0, 32], sizes = [16, 32], strides = [1, 1]} : vector<16x96xf32> to vector<16x32xf32>
    %11 = arith.truncf %10 : vector<16x32xf32> to vector<16x32xbf16>
    %c0_7 = arith.constant 0 : index
    %c0_8 = arith.constant 0 : index
    %12 = vector.load %arg5[%c0_7, %c0_8] : memref<16x32xbf16, #tpu.memory_space<vmem>>, vector<16x32xbf16>
    tpu.vector_store %arg5[%c0_7, %c0_8], %11 {strides = array<i32>} : memref<16x32xbf16, #tpu.memory_space<vmem>>, vector<16x32xbf16>,
    %13 = vector.extract_strided_slice %6 {offsets = [0, 64], sizes = [16, 32], strides = [1, 1]} : vector<16x96xf32> to vector<16x32xf32>
    %14 = arith.truncf %13 : vector<16x32xf32> to vector<16x32xbf16>
    %c0_9 = arith.constant 0 : index
    %c0_10 = arith.constant 0 : index
    %15 = vector.load %arg6[%c0_9, %c0_10] : memref<16x32xbf16, #tpu.memory_space<vmem>>, vector<16x32xbf16>
    tpu.vector_store %arg6[%c0_9, %c0_10], %14 {strides = array<i32>} : memref<16x32xbf16, #tpu.memory_space<vmem>>, vector<16x32xbf16>,
    return
  }
  func.func @transform_0(%arg0: i32) -> (i32, i32) {
    %c0_i32 = arith.constant 0 : i32
    %c0_i32_0 = arith.constant 0 : i32
    return %arg0, %c0_i32 : i32, i32
  }
  func.func @transform_1(%arg0: i32) -> (i32, i32) {
    %c0_i32 = arith.constant 0 : i32
    %c0_i32_0 = arith.constant 0 : i32
    %c0_i32_1 = arith.constant 0 : i32
    return %c0_i32, %c0_i32_0 : i32, i32
  }
  func.func @transform_2(%arg0: i32) -> (i32, i32) {
    %c0_i32 = arith.constant 0 : i32
    %c0_i32_0 = arith.constant 0 : i32
    %c0_i32_1 = arith.constant 0 : i32
    return %c0_i32, %c0_i32_0 : i32, i32
  }
  func.func @transform_3(%arg0: i32) -> (i32, i32) {
    %c0_i32 = arith.constant 0 : i32
    %c0_i32_0 = arith.constant 0 : i32
    return %arg0, %c0_i32 : i32, i32
  }
  func.func @transform_4(%arg0: i32) -> (i32, i32) {
    %c0_i32 = arith.constant 0 : i32
    %c0_i32_0 = arith.constant 0 : i32
    return %arg0, %c0_i32 : i32, i32
  }
  func.func @transform_5(%arg0: i32) -> (i32, i32) {
    %c0_i32 = arith.constant 0 : i32
    %c0_i32_0 = arith.constant 0 : i32
    return %arg0, %c0_i32 : i32, i32
  }
}

</mosaic_0001>

<bundles_post_ra>
// kernel: tpu_custom_call.1
= control target key start
LH: loop header
LB: loop body
LE: loop exit
PB: predicated region body
PF: predicated region fallthrough
CT: control target
= control target key end

     0   :  { %11 = vsyncpa [#allocation3], 0  ;;  %s522_s0 = inlined_call_operand.hbm [shape: f32[16,32], index: 0, kind: input, shape index: {}]   ;;  %s523_s1 = inlined_call_operand.hbm [shape: bf16[32,96], index: 1, kind: input, shape index: {}]   ;;  %s524_s2 = inlined_call_operand.hbm [shape: f32[1,96], index: 2, kind: input, shape index: {}]   ;;  %s525_s3 = inlined_call_operand.hbm [shape: bf16[16,32], index: 3, kind: output, shape index: {0}]   ;;  %s526_s4 = inlined_call_operand.hbm [shape: bf16[16,32], index: 4, kind: output, shape index: {1}]   ;;  %s527_s5 = inlined_call_operand.hbm [shape: bf16[16,32], index: 5, kind: output, shape index: {2}]  }
   0x1   :  { %12 = vsyncpa [#allocation6], 0 }
   0x2   :  { %13 = vsyncpa [#allocation4], 0 }
   0x3   :  { %14 = vsyncpa [#allocation10], 0  ;;  %s380_s18 = smov [#allocation5]   ;;  %s240_s22 = scalar_lea.hbm %s523_s1, 256 }
   0x4   :  { %s32_s19 = sshll.u32 %s380_s18, 4  ;;  %p241_p0 = scmp.ne.s32.totalorder %s523_s1, %s240_s22  ;;  %s33_s19 = int_to_ptr.vmem [resolvable:$true] %s32_s19 }
   0x5   :  { %p244_p1 = scmp.lt.u32.totalorder %s240_s22, %s523_s1 }
   0x7   :  { %p246_p2 = pnand %p244_p1, %p241_p0 }
   0x9   :  { %249 = shalt.err (!%p246_p2)
}
   0xa   :  { %s250_s27 = scalar_lea.vmem %s33_s19, 256  ;;  %p255_p4 = scmp.lt.s32.totalorder %s33_s19, %s33_s19 }
   0xb   :  { %p251_p3 = scmp.ne.s32.totalorder %s33_s19, %s250_s27  ;;  %p256_p5 = scmp.lt.s32.totalorder %s250_s27, %s250_s27 }
   0xd   :  { %p257_p6 = por %p256_p5, %p255_p4 }
   0xf   :  { %p258_p7 = pnand %p257_p6, %p251_p3 }
  0x11   :  { %261 = shalt.err (!%p258_p7)
}
  0x12   :  { %s381_s28 = smov 64   ;;  %s382_s29 = smov 4  }
  0x13   :  { %38 = dma.hbm_to_vmem [thread:$0]  %s523_s1, 256, %s33_s19, [#allocation6], %s381_s28, %s381_s28, %s382_s29  }
  0x14   :  { %s383_s7 = smov [#allocation2]   ;;  %s262_s11 = scalar_lea.hbm %s522_s0, 256 }
  0x15   :  { %s20_s8 = sshll.u32 %s383_s7, 4  ;;  %p263_p8 = scmp.ne.s32.totalorder %s522_s0, %s262_s11  ;;  %s21_s8 = int_to_ptr.vmem [resolvable:$true] %s20_s8 }
  0x16   :  { %p266_p9 = scmp.lt.u32.totalorder %s262_s11, %s522_s0 }
  0x18   :  { %p268_p10 = pnand %p266_p9, %p263_p8 }
  0x1a   :  { %271 = shalt.err (!%p268_p10)
}
  0x1b   :  { %s272_s16 = scalar_lea.vmem %s21_s8, 256  ;;  %p277_p12 = scmp.lt.s32.totalorder %s21_s8, %s21_s8 }
  0x1c   :  { %p273_p11 = scmp.ne.s32.totalorder %s21_s8, %s272_s16  ;;  %p278_p13 = scmp.lt.s32.totalorder %s272_s16, %s272_s16 }
  0x1e   :  { %p279_p0 = por %p278_p13, %p277_p12 }
  0x20   :  { %p280_p1 = pnand %p279_p0, %p273_p11 }
  0x22   :  { %283 = shalt.err (!%p280_p1)
}
  0x23   :  { %s384_s1 = smov 128   ;;  %s385_s17 = smov 8  }
  0x24   :  { %26 = dma.hbm_to_vmem [thread:$0]  %s522_s0, 256, %s21_s8, [#allocation3], %s384_s1, %s384_s1, %s385_s17  }
  0x25   :  { %s386_s20 = smov [#allocation7]   ;;  %s284_s24 = scalar_lea.hbm %s524_s2, 16 }
  0x26   :  { %s45_s21 = sshll.u32 %s386_s20, 4  ;;  %p285_p2 = scmp.ne.s32.totalorder %s524_s2, %s284_s24  ;;  %s46_s21 = int_to_ptr.vmem [resolvable:$true] %s45_s21 }
  0x27   :  { %p288_p3 = scmp.lt.u32.totalorder %s284_s24, %s524_s2 }
  0x29   :  { %p290_p4 = pnand %p288_p3, %p285_p2 }
  0x2b   :  { %293 = shalt.err (!%p290_p4)
}
  0x2c   :  { %s294_s6 = scalar_lea.vmem %s46_s21, 16  ;;  %s298_s0 = scalar_lea.vmem %s46_s21, 32 }
  0x2d   :  { %p295_p5 = scmp.ne.s32.totalorder %s46_s21, %s294_s6  ;;  %p299_p6 = scmp.lt.s32.totalorder %s46_s21, %s46_s21 }
  0x2e   :  { %p300_p7 = scmp.lt.s32.totalorder %s298_s0, %s294_s6 }
  0x30   :  { %p301_p8 = por %p300_p7, %p299_p6 }
  0x32   :  { %p302_p9 = pnand %p301_p8, %p295_p5 }
  0x34   :  { %305 = shalt.err (!%p302_p9)
}
  0x35   :  { %48 = dma.hbm_to_vmem [thread:$0]  %s524_s2, 16, %s46_s21, [#allocation6]  }
  0x36   :  { %372 = dma.done.wait [#allocation3], 256  }
  0x37   :  { %373 = vsyncadd [#allocation3], 4294967040 }
  0x38   :  { %374 = dma.done.wait [#allocation6], 272  }
  0x39   :  { %375 = vsyncadd [#allocation6], 4294967024  ;;  %v387_v0 = vmov 0.0   ;;  %vm388_vm0 = vmmov 0   ;;  %v238_v1 = vld [vmem:[#allocation5] sm:$0xff]   ;;  %v239_v2 = vld [vmem:[#allocation5 + $0x8] sm:$0xff]  }
  0x3a   :  { %217 = vmatprep.subr.bf16.mxu0 %v387_v0  ;;  %221 = vmatprep.mubr.msk.bf16.mxu0 %vm388_vm0, %v387_v0  ;;  %v59_v3 = vld [vmem:[#allocation2] sm:$0xff]  ;;  %v60_v4 = vld [vmem:[#allocation2 + $0x8] sm:$0xff]  ;;  %vm85_vm1 = vcmask 261120   ;;  %vm138_vm2 = vcmask 257024   ;;  %s389_s2 = smov [#allocation8]   ;;  %s390_s10 = smov 96  }
  0x3b   :  { %218 = vmatpush3.bf16.msra.mxu0 %v238_v1  ;;  %v61_v5 = vpack.c.bf16 %v60_v4, %v59_v3  ;;  %v206_v6 = vld [vmem:[#allocation7] ss:$0 sm:$0xff]  ;;  %s162_s9 = sshll.u32 %s389_s2, 4  ;;  %s163_s9 = int_to_ptr.vmem [resolvable:$true] %s162_s9 }
  0x3c   :  { %219 = vmatprep.subr.bf16.mxu0 %v387_v0  ;;  %s306_s11 = scalar_lea.vmem %s163_s9, 128  ;;  %p311_p11 = scmp.lt.s32.totalorder %s163_s9, %s163_s9 }
  0x3d   :  { %p307_p10 = scmp.ne.s32.totalorder %s163_s9, %s306_s11  ;;  %p312_p12 = scmp.lt.s32.totalorder %s306_s11, %s306_s11 }
  0x3f   :  { %220 = vmatpush3.bf16.msra.mxu0 %v239_v2  ;;  %p313_p13 = por %p312_p12, %p311_p11 }
  0x41   :  { %p314_p0 = pnand %p313_p13, %p307_p10 }
  0x42   :  { %222 = vmatmul.mubr.msk.bf16.vlgmr.msra.gmra.mrb[0].mxu0 %vm85_vm1, %v61_v5 }
 0x115   :  { %v123_v7 = vpop.f32.mrb[0].mxu0 }
 0x116   :  { %v124_v8 = vadd.f32 %v206_v6, %v123_v7  ;;  %v223_v9 = vpop.f32.mrb[1].mxu0 }
 0x117   :  { %v126_v10 = vpop.f32.mrb[2].mxu0 }
 0x118   :  { %v212_v11 = vpack.c.bf16 %v124_v8, %v124_v8  ;;  %v127_v12 = vadd.f32 %v206_v6, %v126_v10  ;;  %v224_v13 = vpop.f32.mrb[3].mxu0 }
 0x11a   :  { %v213_v14 = vpack.c.bf16 %v127_v12, %v127_v12  ;;  %149 = vrot.lane.b32.xlu1 %v212_v11, %s381_s28  ;;  %141 = vrot.lane.b32.xlu0 %v212_v11, %s390_s10  ;;  %139 = vst.msk [vmem:[#allocation8] sm:$0xf] %vm138_vm2, %v212_v11 }
 0x11c   :  { %140 = vst.msk [vmem:[#allocation8 + $0x4] sm:$0xf] %vm138_vm2, %v213_v14 }
 0x11d   :  { %317 = shalt.err (!%p314_p0)
}
 0x11e   :  { %s318_s14 = scalar_lea.hbm %s525_s3, 128 }
 0x11f   :  { %p319_p1 = scmp.ne.s32.totalorder %s525_s3, %s318_s14  ;;  %p322_p2 = scmp.lt.u32.totalorder %s318_s14, %s525_s3 }
 0x121   :  { %p324_p3 = pnand %p322_p2, %p319_p1 }
 0x123   :  { %327 = shalt.err (!%p324_p3)
}
 0x124   :  { %168 = dma.vmem_to_hbm [thread:$0]  %s163_s9, 128, %s525_s3, [#allocation4], %s381_s28, %s381_s28, %s382_s29  }
 0x125   :  { %151 = vrot.lane.b32.xlu1 %v213_v14, %s381_s28  ;;  %143 = vrot.lane.b32.xlu0 %v213_v14, %s390_s10  ;;  %s391_s20 = smov [#allocation9]   ;;  %s392_s22 = smov [#allocation11]  }
 0x126   :  { %s174_s21 = sshll.u32 %s391_s20, 4  ;;  %s186_s23 = sshll.u32 %s392_s22, 4  ;;  %s175_s21 = int_to_ptr.vmem [resolvable:$true] %s174_s21  ;;  %s483_s23 = int_to_ptr.vmem [resolvable:$true] %s186_s23 }
 0x127   :  { %s328_s3 = scalar_lea.vmem %s175_s21, 128  ;;  %p333_p5 = scmp.lt.s32.totalorder %s175_s21, %s175_s21 }
 0x128   :  { %p329_p4 = scmp.ne.s32.totalorder %s175_s21, %s328_s3  ;;  %p334_p6 = scmp.lt.s32.totalorder %s328_s3, %s328_s3 }
 0x12a   :  { %p335_p7 = por %p334_p6, %p333_p5 }
 0x12c   :  { %p336_p8 = pnand %p335_p7, %p329_p4 }
 0x18c   :  { %v150_v15 = vpop.permute.xlu1 %149  ;;  %v142_v16 = vpop.permute.xlu0 %141 }
 0x18d   :  { %155 = vst.msk [vmem:[#allocation11] sm:$0xf] %vm138_vm2, %v150_v15  ;;  %147 = vst.msk [vmem:[#allocation9] sm:$0xf] %vm138_vm2, %v142_v16 }
 0x197   :  { %v152_v17 = vpop.permute.xlu1 %151  ;;  %v144_v18 = vpop.permute.xlu0 %143 }
 0x198   :  { %156 = vst.msk [vmem:[#allocation11 + $0x4] sm:$0xf] %vm138_vm2, %v152_v17  ;;  %148 = vst.msk [vmem:[#allocation9 + $0x4] sm:$0xf] %vm138_vm2, %v144_v18 }
 0x199   :  { %339 = shalt.err (!%p336_p8)
}
 0x19a   :  { %s340_s26 = scalar_lea.hbm %s526_s4, 128 }
 0x19b   :  { %p341_p9 = scmp.ne.s32.totalorder %s526_s4, %s340_s26  ;;  %p344_p10 = scmp.lt.u32.totalorder %s340_s26, %s526_s4 }
 0x19d   :  { %p346_p11 = pnand %p344_p10, %p341_p9 }
 0x19f   :  { %349 = shalt.err (!%p346_p11)
}
 0x1a0   :  { %180 = dma.vmem_to_hbm [thread:$0]  %s175_s21, 128, %s526_s4, [#allocation10], %s381_s28, %s381_s28, %s382_s29  }
 0x1a1   :  { %s350_s2 = scalar_lea.vmem %s483_s23, 128  ;;  %p355_p13 = scmp.lt.s32.totalorder %s483_s23, %s483_s23 }
 0x1a2   :  { %p351_p12 = scmp.ne.s32.totalorder %s483_s23, %s350_s2  ;;  %p356_p0 = scmp.lt.s32.totalorder %s350_s2, %s350_s2 }
 0x1a4   :  { %p357_p1 = por %p356_p0, %p355_p13 }
 0x1a6   :  { %p358_p2 = pnand %p357_p1, %p351_p12 }
 0x1a8   :  { %361 = shalt.err (!%p358_p2)
}
 0x1a9   :  { %s362_s11 = scalar_lea.hbm %s527_s5, 128 }
 0x1aa   :  { %p363_p3 = scmp.ne.s32.totalorder %s527_s5, %s362_s11  ;;  %p366_p4 = scmp.lt.u32.totalorder %s362_s11, %s527_s5 }
 0x1ac   :  { %p368_p5 = pnand %p366_p4, %p363_p3 }
 0x1ae   :  { %371 = shalt.err (!%p368_p5)
}
 0x1af   :  { %192 = dma.vmem_to_hbm [thread:$0]  %s483_s23, 128, %s527_s5, [#allocation10], %s381_s28, %s381_s28, %s382_s29  }
 0x1b0   :  { %376 = dma.done.wait [#allocation4], 128  }
 0x1b1   :  { %377 = vsyncadd [#allocation4], 4294967168 }
 0x1b2   :  { %378 = dma.done.wait [#allocation10], 256  }
 0x1b3   :  { %379 = vsyncadd [#allocation10], 4294967040 }
 0x1b4   :  { %202 = vsyncpa [#allocation3], 1 }
 0x1b5   :  { %203 = vsyncpa [#allocation6], 1 }
 0x1b6   :  { %204 = vsyncpa [#allocation4], 1 }
 0x1b7   :  { %205 = vsyncpa [#allocation10], 1 }

</bundles_post_ra>
